<compile_context>
chip_gen: v5e
topology: v5e:2x2
jax: 0.10.0
libtpu: 0.0.40
codegen_flags: <defaults>
</compile_context>

<pallas_src>
import jax
import jax.numpy as jnp
from jax import lax
from jax.experimental import pallas as pl
from jax.experimental.pallas import tpu as pltpu


def _fused_mlp_kernel(
    x_ref,     # (BN, D)  input tile, natural layout (batch on sublanes)
    w1T_ref,   # (H, D)   layer-1 weight (input transform folded in), transposed
    b1_ref,    # (H, 1)   layer-1 bias  (input transform folded in), f32
    w2T_ref,   # (H, H)   layer-2 weight, transposed
    b2_ref,    # (H, 1)   layer-2 bias, f32
    w3c_ref,   # (H, 1)   layer-3 weight column (outcome scale folded in), f32
    b3_ref,    # (1,)     layer-3 bias (outcome scale+mean folded in), SMEM scalar
    out_ref,   # (1, BN)  lane-dense output tile
):
    # Cast the x tile in-kernel (bf16 path); no-op in the f32 path.  Keeping the
    # cast inside the kernel keeps HBM-side activations f32 (v5e-friendly).
    x = x_ref[...].astype(w1T_ref.dtype)

    # (H, D) . (BN, D) contracting on D for both operands -> (H, BN).
    # No transpose of x is materialized; features land on sublanes, batch on lanes.
    h1 = jnp.tanh(
        lax.dot_general(
            w1T_ref[...], x, (((1,), (1,)), ((), ())),
            preferred_element_type=jnp.float32,
        )
        + b1_ref[...]
    )
    h2 = jnp.tanh(
        jnp.dot(
            w2T_ref[...], h1.astype(w2T_ref.dtype),
            preferred_element_type=jnp.float32,
        )
        + b2_ref[...]
    )
    # Layer 3 has M=1: do it on VPU (multiply) + XLU (sublane reduce), not MXU.
    out_ref[...] = jnp.sum(w3c_ref[...] * h2, axis=0, keepdims=True) + b3_ref[0]


def _round_up(v, m):
    return ((v + m - 1) // m) * m


def fold_params(params, *, use_bf16=True):
    """Fold input transform into layer 1 and outcome untransform into layer 3,
    transpose for the features-on-sublanes kernel layout, and (optionally) store
    the matmul weights in bf16 for native MXU rate."""
    inv_range = 1.0 / params["x_range"]                                  # (1, D)
    w1f = params["w1"] * inv_range.T                                     # (D, H)
    b1f = params["b1"] - (params["x_min"] * inv_range) @ params["w1"]    # (1, H)
    y_scale = params["y_scale"][0, 0]
    y_mean = params["y_mean"][0, 0]
    w3f = params["w3"] * y_scale                                         # (H, 1)
    b3f = params["b3"][0, 0] * y_scale + y_mean                          # scalar

    mm_dtype = jnp.bfloat16 if use_bf16 else jnp.float32
    return {
        "w1T": w1f.T.astype(mm_dtype),          # (H, D)  MXU operand
        "b1T": b1f.T,                           # (H, 1)  f32
        "w2T": params["w2"].T.astype(mm_dtype), # (H, H)  MXU operand
        "b2T": params["b2"].T,                  # (H, 1)  f32
        "w3c": w3f,                             # (H, 1)  f32 (VPU layer 3)
        "b3": jnp.reshape(b3f, (1,)).astype(jnp.float32),  # (1,) SMEM scalar
    }


def transformed_model_forward(x, params, *, block_n=2048, use_bf16=True):
    """x: (N, D) float32. Returns (N, 1) float32 == TransformedModel.forward(x)."""
    N, D = x.shape
    fp = fold_params(params, use_bf16=use_bf16)
    H = fp["w1T"].shape[0]

    if N <= 128:
        # Single grid step; blocks equal the full array dims (no (8,128) issue).
        bn = N
        n_pad = N
    else:
        # >=2 grid steps so the "parallel" axis shards across both v7x TCs,
        # capped at block_n (amortizes per-step overhead), always 128-aligned.
        bn = min(_round_up(block_n, 128), _round_up(pl.cdiv(N, 2), 128))
        n_pad = _round_up(N, bn)

    grid = (n_pad // bn,)
    x_in = x if n_pad == N else jnp.pad(x, ((0, n_pad - N), (0, 0)))

    full = lambda shape: pl.BlockSpec(shape, lambda i: (0, 0))

    out = pl.pallas_call(
        _fused_mlp_kernel,
        out_shape=jax.ShapeDtypeStruct((1, n_pad), jnp.float32),
        grid=grid,
        in_specs=[
            pl.BlockSpec((bn, D), lambda i: (i, 0)),             # x, batch-tiled
            full((H, D)),                                        # w1T (replicated)
            full((H, 1)),                                        # b1T
            full((H, H)),                                        # w2T
            full((H, 1)),                                        # b2T
            full((H, 1)),                                        # w3 column
            pl.BlockSpec(memory_space=pltpu.MemorySpace.SMEM),   # b3 scalar (1,)
        ],
        out_specs=pl.BlockSpec((1, bn), lambda i: (0, i)),       # lane-dense output
        compiler_params=pltpu.CompilerParams(
            dimension_semantics=("parallel",),
        ),
    )(x_in, fp["w1T"], fp["b1T"], fp["w2T"], fp["b2T"], fp["w3c"], fp["b3"])

    return out[:, :N].reshape(N, 1)


def reference_forward(x, p):
    """Pure-JAX reference mirroring TransformedModel.forward (unfused params)."""
    x_model = (x - p["x_min"]) / p["x_range"]
    h1 = jnp.tanh(x_model @ p["w1"] + p["b1"])
    h2 = jnp.tanh(h1 @ p["w2"] + p["b2"])
    y_model = h2 @ p["w3"] + p["b3"]
    return y_model * p["y_scale"] + p["y_mean"]


def make_params(key, D, H):
    ks = jax.random.split(key, 8)
    x_min = jax.random.uniform(ks[0], (1, D), jnp.float32, -2.0, -1.0)
    x_max = jax.random.uniform(ks[1], (1, D), jnp.float32, 1.0, 2.0)
    return {
        "x_min": x_min,
        "x_range": x_max - x_min,
        "w1": jax.random.normal(ks[2], (D, H), jnp.float32) * (1.0 / jnp.sqrt(D)),
        "b1": jax.random.normal(ks[3], (1, H), jnp.float32) * 0.1,
        "w2": jax.random.normal(ks[4], (H, H), jnp.float32) * (1.0 / jnp.sqrt(H)),
        "b2": jax.random.normal(ks[5], (1, H), jnp.float32) * 0.1,
        "w3": jax.random.normal(ks[6], (H, 1), jnp.float32) * (1.0 / jnp.sqrt(H)),
        "b3": jnp.zeros((1, 1), jnp.float32),
        "y_scale": jnp.array([[2.5]], jnp.float32),   # outcome transform std
        "y_mean": jnp.array([[0.7]], jnp.float32),    # outcome transform mean
    }


if __name__ == "__main__":
    key = jax.random.PRNGKey(0)
    k_x, k_p, k_x2 = jax.random.split(key, 3)

    N, D, H = 16, 8, 32                 # small shapes: batch=16, features=8, hidden=32
    x = jax.random.normal(k_x, (N, D), jnp.float32)
    params = make_params(k_p, D, H)

    # TODO(synk): set_transformers(eval/train) toggling is a numerical no-op here
    # (pure affine transforms, frozen eval-mode MLP) and is not represented.

    y_ref = reference_forward(x, params)

    # f32-operand path: affine folding is exact, tight tolerance.
    y32 = jax.block_until_ready(transformed_model_forward(x, params, use_bf16=False))
    assert y32.shape == (N, 1)
    assert jnp.allclose(y32, y_ref, atol=1e-4, rtol=1e-4), "f32 path mismatch"

    # bf16-MXU-operand path (native MXU rate): quantization-limited tolerance.
    y16 = jax.block_until_ready(transformed_model_forward(x, params, use_bf16=True))
    assert y16.shape == (N, 1)
    assert jnp.allclose(y16, y_ref, atol=5e-2, rtol=5e-2), "bf16 path mismatch"

    # Ragged / multi-step grid path (N=300 -> padded to 2 tiles of 256).
    N2 = 300
    x2 = jax.random.normal(k_x2, (N2, D), jnp.float32)
    y2_ref = reference_forward(x2, params)
    y2 = jax.block_until_ready(transformed_model_forward(x2, params, use_bf16=True))
    assert y2.shape == (N2, 1)
    assert jnp.allclose(y2, y2_ref, atol=5e-2, rtol=5e-2), "ragged path mismatch"

    print("KERNEL_OK")
</pallas_src>

<mosaic_0001>
module attributes {stable_mosaic.version = 11 : i64} {
  func.func @_fused_mlp_kernel(%arg0: i32, %arg1: memref<16x8xf32, #tpu.memory_space<vmem>>, %arg2: memref<32x8xf32, #tpu.memory_space<vmem>>, %arg3: memref<32x1xf32, #tpu.memory_space<vmem>>, %arg4: memref<32x32xf32, #tpu.memory_space<vmem>>, %arg5: memref<32x1xf32, #tpu.memory_space<vmem>>, %arg6: memref<32x1xf32, #tpu.memory_space<vmem>>, %arg7: memref<1xf32, #tpu.memory_space<smem>>, %arg8: memref<1x16xf32, #tpu.memory_space<vmem>>) attributes {dimension_semantics = [#tpu.dimension_semantics<parallel>], iteration_bounds = array<i64: 1>, scalar_prefetch = 0 : i64, scratch_operands = 0 : i64, tpu.core_type = #tpu.core_type<tc>, window_params = [{transform_indices = @transform_0, window_bounds = array<i64: 16, 8>}, {pipeline_mode = #tpu.pipeline_mode<synchronous>, transform_indices = @transform_1, window_bounds = array<i64: 32, 8>}, {pipeline_mode = #tpu.pipeline_mode<synchronous>, transform_indices = @transform_2, window_bounds = array<i64: 32, 1>}, {pipeline_mode = #tpu.pipeline_mode<synchronous>, transform_indices = @transform_3, window_bounds = array<i64: 32, 32>}, {pipeline_mode = #tpu.pipeline_mode<synchronous>, transform_indices = @transform_4, window_bounds = array<i64: 32, 1>}, {pipeline_mode = #tpu.pipeline_mode<synchronous>, transform_indices = @transform_5, window_bounds = array<i64: 32, 1>}, {transform_indices = @transform_6, window_bounds = array<i64: 1>}, {transform_indices = @transform_7, window_bounds = array<i64: 1, 16>}]} {
    %c0 = arith.constant 0 : index
    %c0_0 = arith.constant 0 : index
    %0 = vector.load %arg1[%c0, %c0_0] : memref<16x8xf32, #tpu.memory_space<vmem>>, vector<16x8xf32>
    %c0_1 = arith.constant 0 : index
    %c0_2 = arith.constant 0 : index
    %1 = vector.load %arg2[%c0_1, %c0_2] : memref<32x8xf32, #tpu.memory_space<vmem>>, vector<32x8xf32>
    %cst = arith.constant dense<0.000000e+00> : vector<32x16xf32>
    %2 = tpu.matmul %1, %0, %cst {dimension_numbers = #tpu.dot_dimension_numbers<[1], [1], [0], [0], [0, 0, 1, 0], [], []>} : vector<32x8xf32>, vector<16x8xf32>, vector<32x16xf32> -> vector<32x16xf32>
    %c0_3 = arith.constant 0 : index
    %c0_4 = arith.constant 0 : index
    %3 = vector.load %arg3[%c0_3, %c0_4] : memref<32x1xf32, #tpu.memory_space<vmem>>, vector<32x1xf32>
    %4 = vector.broadcast %3 : vector<32x1xf32> to vector<32x16xf32>
    %5 = arith.addf %2, %4 : vector<32x16xf32>
    %6 = math.tanh %5 : vector<32x16xf32>
    %c0_5 = arith.constant 0 : index
    %c0_6 = arith.constant 0 : index
    %7 = vector.load %arg4[%c0_5, %c0_6] : memref<32x32xf32, #tpu.memory_space<vmem>>, vector<32x32xf32>
    %cst_7 = arith.constant dense<0.000000e+00> : vector<32x16xf32>
    %8 = tpu.matmul %7, %6, %cst_7 {dimension_numbers = #tpu.dot_dimension_numbers<[1], [0], [0], [1], [0, 0, 1, 1], [], []>} : vector<32x32xf32>, vector<32x16xf32>, vector<32x16xf32> -> vector<32x16xf32>
    %c0_8 = arith.constant 0 : index
    %c0_9 = arith.constant 0 : index
    %9 = vector.load %arg5[%c0_8, %c0_9] : memref<32x1xf32, #tpu.memory_space<vmem>>, vector<32x1xf32>
    %10 = vector.broadcast %9 : vector<32x1xf32> to vector<32x16xf32>
    %11 = arith.addf %8, %10 : vector<32x16xf32>
    %12 = math.tanh %11 : vector<32x16xf32>
    %c0_10 = arith.constant 0 : index
    %c0_11 = arith.constant 0 : index
    %13 = vector.load %arg6[%c0_10, %c0_11] : memref<32x1xf32, #tpu.memory_space<vmem>>, vector<32x1xf32>
    %14 = vector.broadcast %13 : vector<32x1xf32> to vector<32x16xf32>
    %15 = arith.mulf %14, %12 : vector<32x16xf32>
    %cst_12 = arith.constant dense<0.000000e+00> : vector<16xf32>
    %16 = vector.multi_reduction <add>, %15, %cst_12 [0] : vector<32x16xf32> to vector<16xf32>
    %17 = vector.shape_cast %16 : vector<16xf32> to vector<1x16xf32>
    %c0_13 = arith.constant 0 : index
    %18 = memref.load %arg7[%c0_13] : memref<1xf32, #tpu.memory_space<smem>>
    %19 = vector.broadcast %18 : f32 to vector<1x16xf32>
    %20 = arith.addf %17, %19 : vector<1x16xf32>
    %c0_14 = arith.constant 0 : index
    %c0_15 = arith.constant 0 : index
    %21 = vector.load %arg8[%c0_14, %c0_15] : memref<1x16xf32, #tpu.memory_space<vmem>>, vector<1x16xf32>
    tpu.vector_store %arg8[%c0_14, %c0_15], %20 {strides = array<i32>} : memref<1x16xf32, #tpu.memory_space<vmem>>, vector<1x16xf32>,
    return
  }
  func.func @transform_0(%arg0: i32) -> (i32, i32) {
    %c0_i32 = arith.constant 0 : i32
    %c0_i32_0 = arith.constant 0 : i32
    return %arg0, %c0_i32 : i32, i32
  }
  func.func @transform_1(%arg0: i32) -> (i32, i32) {
    %c0_i32 = arith.constant 0 : i32
    %c0_i32_0 = arith.constant 0 : i32
    %c0_i32_1 = arith.constant 0 : i32
    return %c0_i32, %c0_i32_0 : i32, i32
  }
  func.func @transform_2(%arg0: i32) -> (i32, i32) {
    %c0_i32 = arith.constant 0 : i32
    %c0_i32_0 = arith.constant 0 : i32
    %c0_i32_1 = arith.constant 0 : i32
    return %c0_i32, %c0_i32_0 : i32, i32
  }
  func.func @transform_3(%arg0: i32) -> (i32, i32) {
    %c0_i32 = arith.constant 0 : i32
    %c0_i32_0 = arith.constant 0 : i32
    %c0_i32_1 = arith.constant 0 : i32
    return %c0_i32, %c0_i32_0 : i32, i32
  }
  func.func @transform_4(%arg0: i32) -> (i32, i32) {
    %c0_i32 = arith.constant 0 : i32
    %c0_i32_0 = arith.constant 0 : i32
    %c0_i32_1 = arith.constant 0 : i32
    return %c0_i32, %c0_i32_0 : i32, i32
  }
  func.func @transform_5(%arg0: i32) -> (i32, i32) {
    %c0_i32 = arith.constant 0 : i32
    %c0_i32_0 = arith.constant 0 : i32
    %c0_i32_1 = arith.constant 0 : i32
    return %c0_i32, %c0_i32_0 : i32, i32
  }
  func.func @transform_6(%arg0: i32) -> i32 {
    %c0_i32 = arith.constant 0 : i32
    %c0_i32_0 = arith.constant 0 : i32
    return %c0_i32 : i32
  }
  func.func @transform_7(%arg0: i32) -> (i32, i32) {
    %c0_i32 = arith.constant 0 : i32
    %c0_i32_0 = arith.constant 0 : i32
    return %c0_i32, %arg0 : i32, i32
  }
}

</mosaic_0001>

<bundles_post_ra>
// kernel: tpu_custom_call.1
= control target key start
LH: loop header
LB: loop body
LE: loop exit
PB: predicated region body
PF: predicated region fallthrough
CT: control target
= control target key end

     0   :  { %vm58_vm0 = vcmask 64512   ;;  %v310_v2 = vmov 0   ;;  %s432_s0 = inlined_call_operand.vmem [shape: f32[16,8], index: 0, kind: input, shape index: {}]   ;;  %s433_s1 = inlined_call_operand.vmem [shape: f32[32,8], index: 1, kind: input, shape index: {}]   ;;  %s434_s2 = inlined_call_operand.vmem [shape: f32[32,1], index: 2, kind: input, shape index: {}]   ;;  %s435_s3 = inlined_call_operand.vmem [shape: f32[32,32], index: 3, kind: input, shape index: {}]   ;;  %s436_s4 = inlined_call_operand.vmem [shape: f32[32,1], index: 4, kind: input, shape index: {}]   ;;  %s437_s5 = inlined_call_operand.vmem [shape: f32[32,1], index: 5, kind: input, shape index: {}]   ;;  %s438_s6 = inlined_call_operand.<no memory space> [shape: f32[1], index: 6, kind: input, shape index: {}]   ;;  %s439_s7 = inlined_call_operand.hbm [shape: f32[1,16], index: 7, kind: output, shape index: {}]  }
   0x1   :  { %v29_v0 = vld [vmem:[%s432_s0 + $0x8] sm:$0xff]  ;;  %v37_v1 = vld [vmem:[%s434_s2 + $0x18] sm:$0xff]  ;;  %265 = vset.pattern.permute.xlu0 %v310_v2  ;;  %v28_v4 = vld [vmem:[%s432_s0] sm:$0xff]  ;;  %266 = vset.pattern.permute.xlu1 %v310_v2 }
   0x2   :  { %257 = vmatpush.xpose.msk.msra.mxu2 %vm58_vm0, %v29_v0  ;;  %v35_v3 = vld [vmem:[%s434_s2 + $0x8] sm:$0xff]  ;;  %55 = vperm.xlu0 %265, %v37_v1  }
   0x3   :  { %247 = vmatpush.xpose.msk.msra.mxu0 %vm58_vm0, %v29_v0  ;;  %267 = vset.pattern.permute.xlu2 %v310_v2 }
   0x4   :  { %45 = vperm.xlu1 %266, %v35_v3  }
   0x5   :  { %13 = vsyncpa [#allocation4], 0  ;;  %v32_v5 = vld [vmem:[%s433_s1 + $0x10] sm:$0xff]  ;;  %v30_v6 = vld [vmem:[%s433_s1] sm:$0xff]  ;;  %vm138_vm1 = vcmask 261120   ;;  %vm212_vm2 = vcmask 130048  }
   0x6   :  { %258 = vmatpush.xpose.msk.msra.mxu2 %vm58_vm0, %v28_v4  ;;  %v36_v7 = vld [vmem:[%s434_s2 + $0x10] sm:$0xff]  ;;  %v34_v8 = vld [vmem:[%s434_s2] sm:$0xff]  ;;  %v33_v9 = vld [vmem:[%s433_s1 + $0x18] sm:$0xff]  ;;  %s311_s17 = smov [#allocation3]   ;;  %s238_s21 = sshll.u32 %s439_s7, 4  ;;  %vm229_vm3 = vcmask 122880   ;;  %s239_s21 = int_to_ptr.hbm [resolvable:$true] %s238_s21 }
   0x7   :  { %248 = vmatpush.xpose.msk.msra.mxu0 %vm58_vm0, %v28_v4  ;;  %v31_v10 = vld [vmem:[%s433_s1 + $0x8] sm:$0xff]  ;;  %v116_v11 = vld [vmem:[%s436_s4 + $0x10] sm:$0xff]  ;;  %v117_v12 = vld [vmem:[%s436_s4 + $0x18] sm:$0xff]  ;;  %s236_s18 = sshll.u32 %s311_s17, 4  ;;  %s237_s18 = int_to_ptr.vmem [resolvable:$true] %s236_s18 }
   0x8   :  { %v185_v13 = vld [vmem:[%s437_s5 + $0x8] sm:$0xff]  ;;  %v186_v14 = vld [vmem:[%s437_s5 + $0x10] sm:$0xff]  ;;  %v114_v18 = vld [vmem:[%s436_s4] sm:$0xff] }
   0x9   :  { %251 = vmatmul.msk.f32.vlgmr.msra.gmra.mxu2 %vm58_vm0, %v32_v5  ;;  %120 = vperm.xlu2 %267, %v114_v18   ;;  %v115_v21 = vld [vmem:[%s436_s4 + $0x8] sm:$0xff]  ;;  %v184_v29 = vld [vmem:[%s437_s5] sm:$0xff]  ;;  %v112_v34 = vld [vmem:[%s435_s3 + $0x10] sm:$0xff] }
   0xa   :  { %249 = vmatmul.msk.f32.vlgmr.msra.gmra.mxu0 %vm58_vm0, %v30_v6  ;;  %50 = vperm.xlu0 %265, %v36_v7   ;;  %v110_v33 = vld [vmem:[%s435_s3] sm:$0xff]  ;;  %v187_v36 = vld [vmem:[%s437_s5 + $0x18] sm:$0xff]  ;;  %v111_v37 = vld [vmem:[%s435_s3 + $0x8] sm:$0xff] }
   0xb   :  { %v113_v38 = vld [vmem:[%s435_s3 + $0x18] sm:$0xff] }
   0xc   :  { %40 = vperm.xlu1 %266, %v34_v8  }
  0x11   :  { %252 = vmatmul.msk.f32.gmra.mxu2 %vm58_vm0, %v33_v9  ;;  %125 = vperm.xlu2 %267, %v115_v21  }
  0x12   :  { %250 = vmatmul.msk.f32.gmra.mxu0 %vm58_vm0, %v31_v10  ;;  %130 = vperm.xlu0 %265, %v116_v11   ;;  %v227_v11 = vstv %s438_s6 }
  0x14   :  { %135 = vperm.xlu1 %266, %v117_v12  }
  0x19   :  { %190 = vperm.xlu2 %267, %v184_v29  }
  0x1a   :  { %195 = vperm.xlu0 %265, %v185_v13  }
  0x1c   :  { %200 = vperm.xlu1 %266, %v186_v14  }
  0x21   :  { %205 = vperm.xlu2 %267, %v187_v36  }
  0x63   :  { %v121_v39 = vpop.permute.xlu2 %120 }
  0x6b   :  { %v126_v41 = vpop.permute.xlu2 %125 }
  0x73   :  { %v191_v50 = vpop.permute.xlu2 %190 }
  0x74   :  { %v56_v15 = vpop.permute.xlu0 %55 }
  0x76   :  { %v46_v19 = vpop.permute.xlu1 %45 }
  0x7b   :  { %v206_v0 = vpop.permute.xlu2 %205 }
  0x7c   :  { %v51_v20 = vpop.permute.xlu0 %50 }
  0x7e   :  { %v41_v27 = vpop.permute.xlu1 %40 }
  0x84   :  { %v131_v43 = vpop.permute.xlu0 %130 }
  0x86   :  { %v136_v47 = vpop.permute.xlu1 %135 }
  0x87   :  { %v94_v16 = vpop.f32.mrf.mxu0 }
  0x88   :  { %v95_v28 = vadd.f32 %v94_v16, %v41_v27 }
  0x8c   :  { %v100_v17 = vpop.f32.mrf.mxu2  ;;  %v196_v56 = vpop.permute.xlu0 %195 }
  0x8d   :  { %v101_v24 = vadd.f32 %v100_v17, %v51_v20 }
  0x8e   :  { %v201_v58 = vpop.permute.xlu1 %200 }
  0x8f   :  { %v97_v22 = vpop.f32.mrf.mxu0 }
  0x90   :  { %v98_v26 = vadd.f32 %v97_v22, %v46_v19 }
  0x94   :  { %v103_v23 = vpop.f32.mrf.mxu2 }
  0x95   :  { %v104_v25 = vadd.f32 %v103_v23, %v56_v15 }
  0x97   :  { %268 = vtanh.f32 %v104_v25 }
  0x98   :  { %270 = vtanh.f32 %v101_v24 }
  0x99   :  { %272 = vtanh.f32 %v98_v26 }
  0x9a   :  { %274 = vtanh.f32 %v95_v28 }
  0x9d   :  { %v269_v30 = vpop.eup %268 }
  0x9e   :  { %163 = vmatpush.msra.mxu1 %v269_v30  ;;  %259 = vmatpush.msra.mxu3 %v269_v30  ;;  %v271_v31 = vpop.eup %270 }
  0x9f   :  { %v273_v32 = vpop.eup %272 }
  0xa0   :  { %164 = vmatpush.msra.mxu1 %v271_v31  ;;  %260 = vmatpush.msra.mxu3 %v271_v31  ;;  %v275_v35 = vpop.eup %274 }
  0xa2   :  { %165 = vmatpush.msra.mxu1 %v273_v32  ;;  %261 = vmatpush.msra.mxu3 %v273_v32 }
  0xa4   :  { %166 = vmatpush.msra.mxu1 %v275_v35  ;;  %262 = vmatpush.msra.mxu3 %v275_v35 }
  0xa5   :  { %253 = vmatmul.msk.f32.vlgmr.msra.gmra.mxu1 %vm138_vm1, %v110_v33  ;;  %255 = vmatmul.msk.f32.vlgmr.msra.gmra.mxu3 %vm138_vm1, %v112_v34 }
  0xad   :  { %254 = vmatmul.msk.f32.gmra.mxu1 %vm138_vm1, %v111_v37  ;;  %256 = vmatmul.msk.f32.gmra.mxu3 %vm138_vm1, %v113_v38 }
 0x122   :  { %v168_v40 = vpop.f32.mrf.mxu1 }
 0x123   :  { %v169_v42 = vadd.f32 %v168_v40, %v121_v39 }
 0x125   :  { %276 = vtanh.f32 %v169_v42 }
 0x128   :  { %v174_v44 = vpop.f32.mrf.mxu3 }
 0x129   :  { %v175_v45 = vadd.f32 %v174_v44, %v131_v43 }
 0x12a   :  { %v171_v46 = vpop.f32.mrf.mxu1 }
 0x12b   :  { %v172_v48 = vadd.f32 %v171_v46, %v126_v41  ;;  %278 = vtanh.f32 %v175_v45  ;;  %v277_v49 = vpop.eup %276 }
 0x12c   :  { %v208_v54 = vmul.f32 %v277_v49, %v191_v50 }
 0x12d   :  { %280 = vtanh.f32 %v172_v48 }
 0x12e   :  { %v213_v59 = vsel %vm212_vm2, %v208_v54, 0.0 }
 0x130   :  { %v177_v51 = vpop.f32.mrf.mxu3 }
 0x131   :  { %v178_v52 = vadd.f32 %v177_v51, %v136_v47  ;;  %v279_v53 = vpop.eup %278 }
 0x132   :  { %v210_v60 = vmul.f32 %v279_v53, %v201_v58 }
 0x133   :  { %v281_v55 = vpop.eup %280  ;;  %282 = vtanh.f32 %v178_v52 }
 0x134   :  { %v209_v57 = vmul.f32 %v281_v55, %v196_v56  ;;  %v216_v1 = vsel %vm212_vm2, %v210_v60, 0.0 }
 0x136   :  { %v214_v61 = vsel %vm212_vm2, %v209_v57, 0.0 }
 0x137   :  { %v215_v62 = vadd.f32 %v214_v61, %v213_v59 }
 0x139   :  { %v283_v63 = vpop.eup %282  ;;  %v217_v3 = vadd.f32 %v216_v1, %v215_v62 }
 0x13a   :  { %v211_v2 = vmul.f32 %v283_v63, %v206_v0 }
 0x13c   :  { %v218_v4 = vsel %vm212_vm2, %v211_v2, 0.0 }
 0x13d   :  { %v219_v5 = vadd.f32 %v218_v4, %v217_v3 }
 0x13f   :  { %v220_v6 = vrot.slane %v219_v5, 4 }
 0x141   :  { %v221_v7 = vadd.f32 %v220_v6, %v219_v5 }
 0x143   :  { %v222_v8 = vrot.slane %v221_v7, 2 }
 0x145   :  { %v223_v9 = vadd.f32 %v222_v8, %v221_v7 }
 0x147   :  { %v224_v10 = vrot.slane %v223_v9, 1 }
 0x149   :  { %v225_v12 = vadd.f32 %v224_v10, %v223_v9 }
 0x14b   :  { %v228_v13 = vadd.f32 %v227_v11, %v225_v12 }
 0x14d   :  { %230 = vst.msk [vmem:[#allocation3] sm:$0x1] %vm229_vm3, %v228_v13 }
 0x14e   :  { %241 = dma.vmem_to_hbm [thread:$0]  %s237_s18, 16, %s239_s21, [#allocation4]  }
 0x14f   :  { %308 = dma.done.wait [#allocation4], 16  }
 0x150   :  { %309 = vsyncadd [#allocation4], 4294967280 }
 0x151   :  { %246 = vsyncpa [#allocation4], 1 }

</bundles_post_ra>
